<compile_context>
chip_gen: v7x
topology: tpu7x:2x2x1
jax: 0.10.0
libtpu: 0.0.40
codegen_flags: <defaults>
</compile_context>

<pallas_src>
import math
from functools import partial

import numpy as np
import jax
import jax.numpy as jnp
from jax.experimental import pallas as pl
from jax.experimental.pallas import tpu as pltpu

# --- model hyper-parameters (synthetic, consistent with __init__ constraints) ---
CHANNELS = 64
PE_DIM = 8
TIME_EMBED_DIM = 16
CONTEXT_DIM = 8
NODE_EMB_OUT = CHANNELS - PE_DIM - TIME_EMBED_DIM - CONTEXT_DIM   # 32
EDGE_EMB_OUT = CHANNELS - TIME_EMBED_DIM                          # 48
BN_EPS = 1e-5
MAX_PERIOD = 10000.0
HALF = TIME_EMBED_DIM // 2                                        # 8

# column layout of the assembled node feature vector h [N, 64]:
#   [ node_emb 0:32 | pe_lin 32:40 | time_emb 40:56 | context 56:64 ]
PE_COL = NODE_EMB_OUT                       # 32
TIME_COL = PE_COL + PE_DIM                  # 40
CTX_COL = TIME_COL + TIME_EMBED_DIM         # 56

# packed LHS layout: [ h (64) | pe (20) | context (64) ] -> 148 columns
LHS_H, LHS_PE, LHS_CTX = 64, 20, 64
LHS_DIM = LHS_H + LHS_PE + LHS_CTX          # 148
PE_LO, PE_HI = LHS_H, LHS_H + LHS_PE        # 64:84

# sinusoidal frequencies, hoisted to a module-level constant (folded under jit)
FREQS_NP = np.exp(-math.log(MAX_PERIOD) *
                  np.arange(HALF, dtype=np.float32) / HALF)[None, :]


def _vmem():
    return pl.BlockSpec(memory_space=pltpu.MemorySpace.VMEM)


# ------------------------------ Pallas kernels ------------------------------

def fused_node_pool_kernel(lhs_ref, t_ref, batch_ref,
                           wpack_ref, bpack_ref, gamma_ref, beta_ref, freqs_ref,
                           w1_ref, b1_ref, w2_ref, b2_ref, w3_ref, b3_ref,
                           out_ref, h_vmem):
    # --- BatchNorm1d(20) (training mode: batch stats, biased variance), fused
    #     in-place into the pe columns of the packed LHS ---
    pe = lhs_ref[:, PE_LO:PE_HI]
    mean = jnp.mean(pe, axis=0, keepdims=True)
    diff = pe - mean
    var = jnp.mean(diff * diff, axis=0, keepdims=True)
    s = jax.lax.rsqrt(var + BN_EPS) * gamma_ref[...]           # [1, 20]
    lhs_ref[:, PE_LO:PE_HI] = pe * s + (beta_ref[...] - mean * s)

    # --- single block-diagonal MXU pass: node_emb | pe_lin | (time slots = 0)
    #     | context_emb deposited at their final column offsets ---
    h_vmem[...] = (jnp.dot(lhs_ref[...], wpack_ref[...],
                           preferred_element_type=jnp.float32) + bpack_ref[...])

    # --- sinusoidal timestep embedding: slice-stored straight into lanes 40:56
    #     (no concatenate / cross-lane shuffle) ---
    args = t_ref[...] * freqs_ref[...]                         # [N, 8]
    h_vmem[:, TIME_COL:TIME_COL + HALF] = jnp.cos(args)
    h_vmem[:, TIME_COL + HALF:CTX_COL] = jnp.sin(args)

    # TODO(synk): external conv stack (EGNN / GPSConv) treated as identity on h.

    # --- global_add_pool as a one-hot [B, N] x [N, C] matmul, then the MLP
    #     epilogue, all without h ever leaving VMEM ---
    num_graphs = out_ref.shape[0]
    n = h_vmem.shape[0]
    gid = jax.lax.broadcasted_iota(jnp.int32, (num_graphs, n), 0)
    onehot = (gid == batch_ref[...]).astype(jnp.float32)
    pooled = jnp.dot(onehot, h_vmem[...], preferred_element_type=jnp.float32)
    z = jnp.maximum(jnp.dot(pooled, w1_ref[...],
                            preferred_element_type=jnp.float32) + b1_ref[...], 0.0)
    z = jnp.maximum(jnp.dot(z, w2_ref[...],
                            preferred_element_type=jnp.float32) + b2_ref[...], 0.0)
    out_ref[...] = jnp.dot(z, w3_ref[...],
                           preferred_element_type=jnp.float32) + b3_ref[...]


def edge_assembly_kernel(ea_ref, t_edge_ref, freqs_ref, we_ref, be_ref, out_ref):
    # K=4 contraction on the VPU: 4 broadcast-FMAs (MXU would be >96% idle).
    ea = ea_ref[...]                                           # [E, 4]
    we = we_ref[...]                                           # [4, 48]
    acc = be_ref[...] + ea[:, 0:1] * we[0:1, :]
    acc = acc + ea[:, 1:2] * we[1:2, :]
    acc = acc + ea[:, 2:3] * we[2:3, :]
    acc = acc + ea[:, 3:4] * we[3:4, :]
    out_ref[:, 0:EDGE_EMB_OUT] = acc
    # per-edge time embedding, slice-stored into lanes 48:64
    args = t_edge_ref[...] * freqs_ref[...]                    # [E, 8]
    out_ref[:, EDGE_EMB_OUT:EDGE_EMB_OUT + HALF] = jnp.cos(args)
    out_ref[:, EDGE_EMB_OUT + HALF:CHANNELS] = jnp.sin(args)


# ------------------------------ parameters ------------------------------

def init_params(key):
    ks = jax.random.split(key, 7)

    def lin(k, fin, fout):
        bound = 1.0 / math.sqrt(fin)
        kw, kb = jax.random.split(k)
        w = jax.random.uniform(kw, (fin, fout), jnp.float32, -bound, bound)
        b = jax.random.uniform(kb, (1, fout), jnp.float32, -bound, bound)
        return w, b

    p = {}
    p['wn'], p['bn'] = lin(ks[0], 64, NODE_EMB_OUT)           # node_emb
    p['wpe'], p['bpe'] = lin(ks[1], 20, PE_DIM)               # pe_lin
    p['wc'], p['bc'] = lin(ks[2], 64, CONTEXT_DIM)            # context_emb
    p['we'], p['be'] = lin(ks[3], 4, EDGE_EMB_OUT)            # edge_emb
    p['w1'], p['b1'] = lin(ks[4], CHANNELS, CHANNELS // 2)    # mlp
    p['w2'], p['b2'] = lin(ks[5], CHANNELS // 2, CHANNELS // 4)
    p['w3'], p['b3'] = lin(ks[6], CHANNELS // 4, 1)
    p['gamma'] = jnp.ones((1, 20), jnp.float32)               # BatchNorm1d affine defaults
    p['beta'] = jnp.zeros((1, 20), jnp.float32)

    # pre-packed block-diagonal weight: one MXU pass places each sub-result at
    # its final column offset; time-embedding columns (40:56) stay zero.
    wpack = jnp.zeros((LHS_DIM, CHANNELS), jnp.float32)
    wpack = wpack.at[0:LHS_H, 0:NODE_EMB_OUT].set(p['wn'])
    wpack = wpack.at[PE_LO:PE_HI, PE_COL:TIME_COL].set(p['wpe'])
    wpack = wpack.at[PE_HI:LHS_DIM, CTX_COL:CHANNELS].set(p['wc'])
    bpack = jnp.zeros((1, CHANNELS), jnp.float32)
    bpack = bpack.at[:, 0:NODE_EMB_OUT].set(p['bn'])
    bpack = bpack.at[:, PE_COL:TIME_COL].set(p['bpe'])
    bpack = bpack.at[:, CTX_COL:CHANNELS].set(p['bc'])
    p['wpack'], p['bpack'] = wpack, bpack
    return p


# ------------------------------ forward wrappers ------------------------------

@jax.jit
def compute_edge_features(params, edge_attr, t):
    """edge_emb(edge_attr.squeeze(-1)) ++ repeat_interleave'd time embedding."""
    E = edge_attr.shape[0]
    N = t.shape[0]
    ea2 = edge_attr.reshape(E, 4).astype(jnp.float32)
    t_col = t.reshape(N, 1).astype(jnp.float32)
    rr, rem = E // N, E % N
    idx = np.concatenate([np.repeat(np.arange(N), rr),
                          np.arange(rem)]).astype(np.int32)
    t_edge = t_col[jnp.asarray(idx)]                           # [E, 1]
    freqs = jnp.asarray(FREQS_NP)
    return pl.pallas_call(
        edge_assembly_kernel,
        out_shape=jax.ShapeDtypeStruct((E, CHANNELS), jnp.float32),
        in_specs=[_vmem()] * 5,
        out_specs=_vmem(),
    )(ea2, t_edge, freqs, params['we'], params['be'])


@partial(jax.jit, static_argnames=("num_graphs",))
def graph_model_forward(params, h, pe, x, t, context, edges, edge_index, edge_attr,
                        batch, num_graphs):
    N = h.shape[0]
    h2 = h.reshape(N, LHS_H).astype(jnp.float32)               # h.squeeze(-1)
    t_col = t.reshape(N, 1).astype(jnp.float32)
    # packed LHS [N, 148] = [ h | pe | context ]  (BN applied in-kernel)
    lhs = jnp.concatenate(
        [h2, pe.astype(jnp.float32), context.astype(jnp.float32)], axis=1)
    freqs = jnp.asarray(FREQS_NP)
    # NOTE: on v6e/v7x the MXU operands (lhs/wpack, pooled/w1..) could be cast
    # to bf16 (f32 accum) to halve DMA bytes; kept f32 here for exactness at
    # these tiny shapes.

    out = pl.pallas_call(
        fused_node_pool_kernel,
        out_shape=jax.ShapeDtypeStruct((num_graphs, 1), jnp.float32),
        in_specs=[_vmem()] * 14,
        out_specs=_vmem(),
        scratch_shapes=[pltpu.VMEM((N, CHANNELS), jnp.float32)],
    )(lhs, t_col, batch.reshape(1, N).astype(jnp.int32),
      params['wpack'], params['bpack'], params['gamma'], params['beta'], freqs,
      params['w1'], params['b1'], params['w2'], params['b2'],
      params['w3'], params['b3'])

    # Edge features feed the external conv stack (identity TODO above); since
    # they are unused here, jit DCE removes this launch entirely at runtime.
    edge_feat = compute_edge_features(params, edge_attr, t)
    del edge_feat, x, edges, edge_index
    return out


# ------------------------------ pure-JAX references ------------------------------

def reference_forward(params, h, pe, t, context, batch, num_graphs):
    N = h.shape[0]
    h2 = h.reshape(N, 64)
    mean = jnp.mean(pe, axis=0, keepdims=True)
    var = jnp.mean((pe - mean) ** 2, axis=0, keepdims=True)
    pe_bn = (pe - mean) / jnp.sqrt(var + BN_EPS) * params['gamma'] + params['beta']
    freqs = jnp.asarray(FREQS_NP)
    args = t.reshape(N, 1).astype(jnp.float32) * freqs
    time_emb = jnp.concatenate([jnp.cos(args), jnp.sin(args)], axis=-1)
    hcat = jnp.concatenate([h2 @ params['wn'] + params['bn'],
                            pe_bn @ params['wpe'] + params['bpe'],
                            time_emb,
                            context @ params['wc'] + params['bc']], axis=-1)
    onehot = (jnp.arange(num_graphs)[:, None] == batch[None, :]).astype(jnp.float32)
    pooled = onehot @ hcat
    z = jnp.maximum(pooled @ params['w1'] + params['b1'], 0.0)
    z = jnp.maximum(z @ params['w2'] + params['b2'], 0.0)
    return z @ params['w3'] + params['b3']


def reference_edge_features(params, edge_attr, t):
    E = edge_attr.shape[0]
    N = t.shape[0]
    ea2 = edge_attr.reshape(E, 4)
    edge = ea2 @ params['we'] + params['be']
    freqs = jnp.asarray(FREQS_NP)
    args = t.reshape(N, 1).astype(jnp.float32) * freqs
    time_emb = jnp.concatenate([jnp.cos(args), jnp.sin(args)], axis=-1)
    rr, rem = E // N, E % N
    idx = np.concatenate([np.repeat(np.arange(N), rr), np.arange(rem)])
    return jnp.concatenate([edge, time_emb[idx]], axis=-1)


if __name__ == "__main__":
    key = jax.random.PRNGKey(0)
    N, E, B = 16, 24, 2            # nodes, edges, graphs (E % N > 0, as the ref code requires)
    ks = jax.random.split(key, 8)
    params = init_params(ks[0])

    h = jax.random.normal(ks[1], (N, 64, 1), jnp.float32)
    pe = jax.random.normal(ks[2], (N, 20), jnp.float32)
    x = jax.random.normal(ks[3], (N, 3), jnp.float32)
    t = jax.random.uniform(ks[4], (N,), jnp.float32, 0.0, 1000.0)
    context = jax.random.normal(ks[5], (N, 64), jnp.float32)
    edge_attr = jax.random.normal(ks[6], (E, 4, 1), jnp.float32)
    edge_index = jax.random.randint(ks[7], (2, E), 0, N)
    edges = edge_index
    batch = jnp.concatenate([jnp.zeros(N // 2, jnp.int32),
                             jnp.ones(N - N // 2, jnp.int32)])

    out = graph_model_forward(params, h, pe, x, t, context, edges, edge_index,
                              edge_attr, batch, num_graphs=B)
    out = jax.block_until_ready(out)
    assert out.shape == (B, 1)
    ref = reference_forward(params, h, pe, t, context, batch, B)
    np.testing.assert_allclose(np.asarray(out), np.asarray(ref), rtol=1e-4, atol=1e-4)

    # validate the edge-assembly kernel separately (its output feeds the
    # external conv stack and is DCE'd inside the fused forward).
    ef = jax.block_until_ready(compute_edge_features(params, edge_attr, t))
    ef_ref = reference_edge_features(params, edge_attr, t)
    np.testing.assert_allclose(np.asarray(ef), np.asarray(ef_ref), rtol=1e-4, atol=1e-4)

    print("KERNEL_OK")
</pallas_src>

<mosaic_0001>
module attributes {stable_mosaic.version = 11 : i64} {
  func.func @edge_assembly_kernel(%arg0: memref<24x4xf32, #tpu.memory_space<vmem>>, %arg1: memref<24x1xf32, #tpu.memory_space<vmem>>, %arg2: memref<1x8xf32, #tpu.memory_space<vmem>>, %arg3: memref<4x48xf32, #tpu.memory_space<vmem>>, %arg4: memref<1x48xf32, #tpu.memory_space<vmem>>, %arg5: memref<24x64xf32, #tpu.memory_space<vmem>>) attributes {dimension_semantics = [], scalar_prefetch = 0 : i64, scratch_operands = 0 : i64, tpu.core_type = #tpu.core_type<tc>} {
    %c0 = arith.constant 0 : index
    %c0_0 = arith.constant 0 : index
    %0 = vector.load %arg0[%c0, %c0_0] : memref<24x4xf32, #tpu.memory_space<vmem>>, vector<24x4xf32>
    %c0_1 = arith.constant 0 : index
    %c0_2 = arith.constant 0 : index
    %1 = vector.load %arg3[%c0_1, %c0_2] : memref<4x48xf32, #tpu.memory_space<vmem>>, vector<4x48xf32>
    %c0_3 = arith.constant 0 : index
    %c0_4 = arith.constant 0 : index
    %2 = vector.load %arg4[%c0_3, %c0_4] : memref<1x48xf32, #tpu.memory_space<vmem>>, vector<1x48xf32>
    %3 = vector.extract_strided_slice %0 {offsets = [0, 0], sizes = [24, 1], strides = [1, 1]} : vector<24x4xf32> to vector<24x1xf32>
    %4 = vector.extract_strided_slice %1 {offsets = [0, 0], sizes = [1, 48], strides = [1, 1]} : vector<4x48xf32> to vector<1x48xf32>
    %5 = vector.broadcast %3 : vector<24x1xf32> to vector<24x48xf32>
    %6 = vector.broadcast %4 : vector<1x48xf32> to vector<24x48xf32>
    %7 = arith.mulf %5, %6 : vector<24x48xf32>
    %8 = vector.broadcast %2 : vector<1x48xf32> to vector<24x48xf32>
    %9 = arith.addf %8, %7 : vector<24x48xf32>
    %10 = vector.extract_strided_slice %0 {offsets = [0, 1], sizes = [24, 1], strides = [1, 1]} : vector<24x4xf32> to vector<24x1xf32>
    %11 = vector.extract_strided_slice %1 {offsets = [1, 0], sizes = [1, 48], strides = [1, 1]} : vector<4x48xf32> to vector<1x48xf32>
    %12 = vector.broadcast %10 : vector<24x1xf32> to vector<24x48xf32>
    %13 = vector.broadcast %11 : vector<1x48xf32> to vector<24x48xf32>
    %14 = arith.mulf %12, %13 : vector<24x48xf32>
    %15 = arith.addf %9, %14 : vector<24x48xf32>
    %16 = vector.extract_strided_slice %0 {offsets = [0, 2], sizes = [24, 1], strides = [1, 1]} : vector<24x4xf32> to vector<24x1xf32>
    %17 = vector.extract_strided_slice %1 {offsets = [2, 0], sizes = [1, 48], strides = [1, 1]} : vector<4x48xf32> to vector<1x48xf32>
    %18 = vector.broadcast %16 : vector<24x1xf32> to vector<24x48xf32>
    %19 = vector.broadcast %17 : vector<1x48xf32> to vector<24x48xf32>
    %20 = arith.mulf %18, %19 : vector<24x48xf32>
    %21 = arith.addf %15, %20 : vector<24x48xf32>
    %22 = vector.extract_strided_slice %0 {offsets = [0, 3], sizes = [24, 1], strides = [1, 1]} : vector<24x4xf32> to vector<24x1xf32>
    %23 = vector.extract_strided_slice %1 {offsets = [3, 0], sizes = [1, 48], strides = [1, 1]} : vector<4x48xf32> to vector<1x48xf32>
    %24 = vector.broadcast %22 : vector<24x1xf32> to vector<24x48xf32>
    %25 = vector.broadcast %23 : vector<1x48xf32> to vector<24x48xf32>
    %26 = arith.mulf %24, %25 : vector<24x48xf32>
    %27 = arith.addf %21, %26 : vector<24x48xf32>
    %c0_5 = arith.constant 0 : index
    %c0_6 = arith.constant 0 : index
    %28 = vector.load %arg5[%c0_5, %c0_6] : memref<24x64xf32, #tpu.memory_space<vmem>>, vector<24x48xf32>
    tpu.vector_store %arg5[%c0_5, %c0_6], %27 {strides = array<i32>} : memref<24x64xf32, #tpu.memory_space<vmem>>, vector<24x48xf32>,
    %c0_7 = arith.constant 0 : index
    %c0_8 = arith.constant 0 : index
    %29 = vector.load %arg1[%c0_7, %c0_8] : memref<24x1xf32, #tpu.memory_space<vmem>>, vector<24x1xf32>
    %c0_9 = arith.constant 0 : index
    %c0_10 = arith.constant 0 : index
    %30 = vector.load %arg2[%c0_9, %c0_10] : memref<1x8xf32, #tpu.memory_space<vmem>>, vector<1x8xf32>
    %31 = vector.broadcast %29 : vector<24x1xf32> to vector<24x8xf32>
    %32 = vector.broadcast %30 : vector<1x8xf32> to vector<24x8xf32>
    %33 = arith.mulf %31, %32 : vector<24x8xf32>
    %34 = math.cos %33 : vector<24x8xf32>
    %c0_11 = arith.constant 0 : index
    %c48 = arith.constant 48 : index
    %35 = vector.load %arg5[%c0_11, %c48] : memref<24x64xf32, #tpu.memory_space<vmem>>, vector<24x8xf32>
    tpu.vector_store %arg5[%c0_11, %c48], %34 {strides = array<i32>} : memref<24x64xf32, #tpu.memory_space<vmem>>, vector<24x8xf32>,
    %36 = math.sin %33 : vector<24x8xf32>
    %c0_12 = arith.constant 0 : index
    %c56 = arith.constant 56 : index
    %37 = vector.load %arg5[%c0_12, %c56] : memref<24x64xf32, #tpu.memory_space<vmem>>, vector<24x8xf32>
    tpu.vector_store %arg5[%c0_12, %c56], %36 {strides = array<i32>} : memref<24x64xf32, #tpu.memory_space<vmem>>, vector<24x8xf32>,
    return
  }
}

</mosaic_0001>

<bundles_post_ra>
// kernel: compute_edge_features.1
= control target key start
LH: loop header
LB: loop body
LE: loop exit
PB: predicated region body
PF: predicated region fallthrough
CT: control target
= control target key end

     0   :  { %v922_v2 = vmov 0   ;;  %s1314_s0 = inlined_call_operand.vmem [shape: f32[24,4], index: 0, kind: input, shape index: {}]   ;;  %s1315_s1 = inlined_call_operand.vmem [shape: f32[24,1], index: 1, kind: input, shape index: {}]   ;;  %s1316_s2 = inlined_call_operand.vmem [shape: f32[1,8], index: 2, kind: input, shape index: {}]   ;;  %s1317_s3 = inlined_call_operand.vmem [shape: f32[4,48], index: 3, kind: input, shape index: {}]   ;;  %s1318_s4 = inlined_call_operand.vmem [shape: f32[1,48], index: 4, kind: input, shape index: {}]   ;;  %s1319_s5 = inlined_call_operand.hbm [shape: f32[24,64], index: 5, kind: output, shape index: {}]  }
   0x1   :  { %v129_v0 = vld [vmem:[%s1315_s1 + $0x10] sm:$0xff]  ;;  %v127_v1 = vld [vmem:[%s1315_s1] sm:$0xff]  ;;  %878 = vset.pattern.permute.xlu1 %v922_v2  ;;  %877 = vset.pattern.permute.xlu0 %v922_v2  ;;  %v128_v3 = vld [vmem:[%s1315_s1 + $0x8] sm:$0xff] }
   0x2   :  { %143 = vperm.xlu1 %878, %v129_v0   ;;  %133 = vperm.xlu0 %877, %v127_v1   ;;  %v21_v4 = vld [vmem:[%s1314_s0] sm:$0xff] }
   0x3   :  { %10 = vsyncpa [#allocation3], 0  ;;  %v22_v5 = vld [vmem:[%s1314_s0 + $0x8] sm:$0xff]  ;;  %v23_v6 = vld [vmem:[%s1314_s0 + $0x10] sm:$0xff]  ;;  %v923_v7 = vmov 1   ;;  %v924_v8 = vmov 2   ;;  %v41_v10 = vlaneseq }
   0x4   :  { %v925_v9 = vmov 3   ;;  %v825_v12 = vld [vmem:[%s1316_s2] ss:$0 sm:$0xff]  ;;  %s933_s7 = smov 56   ;;  %s934_s8 = smov [#allocation2]  }
   0x5   :  { %v42_v11 = vshrl.u32 %v41_v10, 7  ;;  %v24_v16 = vld [vmem:[%s1317_s3] sm:$0xf]  ;;  %v930_v10 = vmov 920167782   ;;  %s813_s9 = sshll.u32 %s934_s8, 4  ;;  %s814_s9 = int_to_ptr.vmem [resolvable:$true] %s813_s9 }
   0x6   :  { %138 = vperm.xlu0 %877, %v128_v3   ;;  %28 = vperm.xlu1 %878, %v21_v4   ;;  %v1010_v41 = vld [vmem:[%s1318_s4] ss:$0 sm:$0xff]  ;;  %s932_s4 = smov 48   ;;  %s898_s10 = scalar_lea.vmem %s814_s9, 384 }
   0x7   :  { %v43_v13 = vsub.s32 0, %v42_v11  ;;  %v71_v26 = vsub.s32 1, %v42_v11  ;;  %v93_v27 = vsub.s32 2, %v42_v11  ;;  %v115_v33 = vsub.s32 3, %v42_v11  ;;  %p899_p0 = scmp.ne.s32.totalorder %s814_s9, %s898_s10  ;;  %p903_p1 = scmp.lt.s32.totalorder %s814_s9, %s814_s9 }
   0x8   :  { %p904_p2 = scmp.lt.s32.totalorder %s898_s10, %s898_s10 }
   0x9   :  { %v44_v22 = vrot.slane %v24_v16, %v43_v13  ;;  %v1012_v44 = vrot.slane %v24_v16, %v71_v26  ;;  %v1014_v45 = vrot.slane %v24_v16, %v93_v27  ;;  %v1025_v53 = vrot.slane %v24_v16, %v115_v33 }
   0xa   :  { %33 = vperm.xlu0 %877, %v22_v5   ;;  %38 = vperm.xlu1 %878, %v23_v6   ;;  %p905_p3 = por %p904_p2, %p903_p1 }
   0xc   :  { %p906_p4 = pnand %p905_p3, %p899_p0 }
   0xe   :  { %879 = vset.pattern.permute.xlu0 %v923_v7  ;;  %880 = vset.pattern.permute.xlu1 %v923_v7 }
   0xf   :  { %58 = vperm.xlu0 %879, %v21_v4   ;;  %62 = vperm.xlu1 %880, %v22_v5  }
  0x13   :  { %881 = vset.pattern.permute.xlu0 %v924_v8  ;;  %66 = vperm.xlu1 %880, %v23_v6  }
  0x14   :  { %80 = vperm.xlu0 %881, %v21_v4  }
  0x17   :  { %882 = vset.pattern.permute.xlu1 %v924_v8  ;;  %v929_v8 = vmov 2102212464  }
  0x18   :  { %883 = vset.pattern.permute.xlu0 %v925_v9  ;;  %84 = vperm.xlu1 %882, %v22_v5  }
  0x19   :  { %102 = vperm.xlu0 %883, %v21_v4   ;;  %v927_v4 = vmov 2475754826  }
  0x1c   :  { %88 = vperm.xlu1 %882, %v23_v6  }
  0x1d   :  { %885 = vset.pattern.permute.xlu0 %v922_v2  ;;  %v926_v2 = vmov 683565275  }
  0x20   :  { %884 = vset.pattern.permute.xlu1 %v925_v9 }
  0x21   :  { %106 = vperm.xlu1 %884, %v22_v5  }
  0x25   :  { %110 = vperm.xlu1 %884, %v23_v6   ;;  %v928_v6 = vmov 2131351028  }
  0x81   :  { %v144_v14 = vpop.permute.xlu1 %143  ;;  %v134_v15 = vpop.permute.xlu0 %133 }
  0x82   :  { %v991_v17 = vmul.f32 %v825_v12, %v144_v14  ;;  %v993_v18 = vmul.f32 %v825_v12, %v134_v15 }
  0x84   :  { %v361_v19 = vand.u32 2147483647, %v991_v17  ;;  %v364_v20 = vand.u32 2139095040, %v991_v17  ;;  %v155_v21 = vand.u32 2147483647, %v993_v18  ;;  %v158_v23 = vand.u32 2139095040, %v993_v18 }
  0x85   :  { %v139_v24 = vpop.permute.xlu0 %138  ;;  %v29_v25 = vpop.permute.xlu1 %28 }
  0x86   :  { %v365_v28 = vshrl.u32 %v364_v20, 23  ;;  %v368_v29 = vand.u32 8388607, %v361_v19  ;;  %v162_v30 = vand.u32 8388607, %v155_v21  ;;  %v1003_v31 = vmul.f32 %v825_v12, %v139_v24 }
  0x87   :  { %v159_v32 = vshrl.u32 %v158_v23, 23  ;;  %v45_v37 = vmul.f32 %v44_v22, %v29_v25 }
  0x88   :  { %v834_v34 = vadd.s32 4294967169, %v365_v28  ;;  %v369_v35 = vor.u32 8388608, %v368_v29  ;;  %v258_v36 = vand.u32 2147483647, %v1003_v31  ;;  %v163_v39 = vor.u32 8388608, %v162_v30 }
  0x89   :  { %v826_v38 = vadd.s32 4294967169, %v159_v32  ;;  %v261_v40 = vand.u32 2139095040, %v1003_v31  ;;  %v34_v42 = vpop.permute.xlu0 %33  ;;  %v39_v50 = vpop.permute.xlu1 %38  ;;  %v1023_v52 = vadd.f32 %v1010_v41, %v45_v37 }
  0x8a   :  { %v371_v43 = vadd.s32 1, %v834_v34  ;;  %v1018_v48 = vand.u32 8388607, %v258_v36  ;;  %v46_v49 = vmul.f32 %v44_v22, %v34_v42  ;;  %v1020_v51 = vshll.u32 %v369_v35, 8 }
  0x8b   :  { %v165_v46 = vadd.s32 1, %v826_v38  ;;  %v262_v47 = vshrl.u32 %v261_v40, 23  ;;  %v1027_v55 = vshll.u32 %v163_v39, 8  ;;  %v1029_v60 = vmul.f32 %v44_v22, %v39_v50 }
  0x8c   :  { %vm372_vm0 = vcmp.gt.s32.totalorder %v371_v43, 0  ;;  %v266_v63 = vor.u32 8388608, %v1018_v48  ;;  %v1037_v0 = vadd.f32 %v1010_v41, %v46_v49  ;;  %v931_v22 = vmov 1326507024  }
  0x8d   :  { %v373_v54 = vsel %vm372_vm0, %v371_v43, 0  ;;  %vm166_vm1 = vcmp.gt.s32.totalorder %v165_v46, 0  ;;  %v830_v56 = vadd.s32 4294967169, %v262_v47 }
  0x8e   :  { %v374_v57 = vshrl.u32 %v373_v54, 5  ;;  %v375_v58 = vand.u32 31, %v373_v54  ;;  %v167_v59 = vsel %vm166_vm1, %v165_v46, 0  ;;  %vm123_vm1 = vcmask 392192  }
  0x8f   :  { %v1031_v61 = vshrl.u32 %v167_v59, 5  ;;  %v1033_v62 = vand.u32 31, %v167_v59  ;;  %v1044_v12 = vadd.s32 1, %v830_v56 }
  0x90   :  { %v376_v1 = vsub.s32 32, %v375_v58  ;;  %v378_v3 = vshll.u32 %v926_v2, %v375_v58  ;;  %v381_v5 = vshll.u32 %v927_v4, %v375_v58  ;;  %v384_v7 = vshll.u32 %v928_v6, %v375_v58 }
  0x91   :  { %v387_v9 = vshll.u32 %v929_v8, %v375_v58  ;;  %v390_v11 = vshll.u32 %v930_v10, %v375_v58  ;;  %vm393_vm2 = vcmp.lt.s32.totalorder %v374_v57, 1  ;;  %vm395_vm3 = vcmp.lt.s32.totalorder %v374_v57, 3 }
  0x92   :  { %v377_v13 = vshrl.u32 %v926_v2, %v376_v1  ;;  %v379_v14 = vshrl.u32 %v927_v4, %v376_v1  ;;  %v382_v15 = vshrl.u32 %v928_v6, %v376_v1  ;;  %v385_v16 = vshrl.u32 %v929_v8, %v376_v1 }
  0x93   :  { %v388_v20 = vshrl.u32 %v930_v10, %v376_v1  ;;  %v391_v23 = vshrl.u32 %v931_v22, %v376_v1  ;;  %vm396_vm4 = vcmp.lt.s32.totalorder %v374_v57, 4  ;;  %v170_v27 = vsub.s32 32, %v1033_v62 }
  0x94   :  { %v380_v24 = vor.u32 %v379_v14, %v378_v3  ;;  %v383_v25 = vor.u32 %v382_v15, %v381_v5  ;;  %v386_v26 = vor.u32 %v385_v16, %v384_v7  ;;  %vm394_vm5 = vcmp.lt.s32.totalorder %v374_v57, 2  ;;  %v63_v5 = vpop.permute.xlu1 %62 }
  0x95   :  { %v389_v28 = vor.u32 %v388_v20, %v387_v9  ;;  %v392_v29 = vor.u32 %v391_v23, %v390_v11  ;;  %v172_v30 = vshll.u32 %v926_v2, %v1033_v62  ;;  %v175_v40 = vshll.u32 %v927_v4, %v1033_v62 }
  0x96   :  { %v397_v32 = vsel %vm393_vm2, %v377_v13, %v380_v24  ;;  %v398_v33 = vsel %vm396_vm4, %v386_v26, 2102212464  ;;  %v401_v34 = vsel %vm393_vm2, %v380_v24, %v383_v25  ;;  %v405_v35 = vsel %vm393_vm2, %v383_v25, %v386_v26 }
  0x97   :  { %v399_v37 = vsel %vm395_vm3, %v383_v25, %v398_v33  ;;  %v402_v38 = vsel %vm396_vm4, %v389_v28, 920167782  ;;  %v406_v39 = vsel %vm396_vm4, %v392_v29, 1326507024  ;;  %v171_v46 = vshrl.u32 %v926_v2, %v170_v27 }
  0x98   :  { %v403_v42 = vsel %vm395_vm3, %v386_v26, %v402_v38  ;;  %v407_v43 = vsel %vm395_vm3, %v389_v28, %v406_v39  ;;  %v173_v47 = vshrl.u32 %v927_v4, %v170_v27  ;;  %v400_v49 = vsel %vm394_vm5, %v397_v32, %v399_v37  ;;  %v59_v28 = vpop.permute.xlu0 %58  ;;  %v67_v33 = vpop.permute.xlu1 %66 }
  0x99   :  { %v404_v50 = vsel %vm394_vm5, %v401_v34, %v403_v42  ;;  %v408_v54 = vsel %vm394_vm5, %v405_v35, %v407_v43  ;;  %v176_v56 = vshrl.u32 %v928_v6, %v170_v27  ;;  %v178_v11 = vshll.u32 %v928_v6, %v1033_v62 }
  0x9a   :  { %v1070_v58 = vmul.u32.u64.low %v1020_v51, %v408_v54  ;;  %v1071_v59 = vmul.u32.u64.high %v1020_v51, %v408_v54, %v1070_v58  ;;  %v1074_v1 = vmul.u32.u64.low %v1020_v51, %v404_v50  ;;  %v1075_v3 = vmul.u32.u64.high %v1020_v51, %v404_v50, %v1074_v1 }
  0x9b   :  { %v174_v7 = vor.u32 %v173_v47, %v172_v30  ;;  %v177_v9 = vor.u32 %v176_v56, %v175_v40  ;;  %v179_v13 = vshrl.u32 %v929_v8, %v170_v27  ;;  %v416_v57 = vmul.u32 %v1020_v51, %v400_v49 }
  0x9c   :  { %v181_v14 = vshll.u32 %v929_v8, %v1033_v62  ;;  %v182_v15 = vshrl.u32 %v930_v10, %v170_v27  ;;  %v185_v16 = vshrl.u32 %v931_v22, %v170_v27  ;;  %v184_v23 = vshll.u32 %v930_v10, %v1033_v62 }
  0x9d   :  { %v180_v20 = vor.u32 %v179_v13, %v178_v11  ;;  %vm187_vm6 = vcmp.lt.s32.totalorder %v1031_v61, 1  ;;  %vm188_vm7 = vcmp.lt.s32.totalorder %v1031_v61, 2  ;;  %vm418_vm8 = vc.u32 %v1071_v59, %v1074_v1  ;;  %v81_v11 = vpop.permute.xlu0 %80 }
  0x9e   :  { %v419_v24 = vadd.s32 1, %v1075_v3  ;;  %v183_v51 = vor.u32 %v182_v15, %v181_v14  ;;  %vm189_vm9 = vcmp.lt.s32.totalorder %v1031_v61, 3  ;;  %v186_v25 = vor.u32 %v185_v16, %v184_v23 }
  0x9f   :  { %vm190_vm10 = vcmp.lt.s32.totalorder %v1031_v61, 4  ;;  %v191_v26 = vsel %vm187_vm6, %v171_v46, %v174_v7  ;;  %v195_v27 = vsel %vm187_vm6, %v174_v7, %v177_v9  ;;  %v199_v32 = vsel %vm187_vm6, %v177_v9, %v180_v20 }
  0xa0   :  { %v420_v29 = vsel %vm418_vm8, %v419_v24, %v1075_v3  ;;  %v192_v62 = vsel %vm190_vm10, %v180_v20, 2102212464  ;;  %v196_v30 = vsel %vm190_vm10, %v183_v51, 920167782  ;;  %v200_v38 = vsel %vm190_vm10, %v186_v25, 1326507024 }
  0xa1   :  { %v421_v34 = vadd.s32 %v420_v29, %v416_v57  ;;  %v193_v35 = vsel %vm189_vm9, %v177_v9, %v192_v62  ;;  %v197_v37 = vsel %vm189_vm9, %v180_v20, %v196_v30  ;;  %v201_v42 = vsel %vm189_vm9, %v183_v51, %v200_v38 }
  0xa2   :  { %v194_v39 = vsel %vm188_vm7, %v191_v26, %v193_v35  ;;  %v198_v40 = vsel %vm188_vm7, %v195_v27, %v197_v37  ;;  %vm269_vm11 = vcmp.gt.s32.totalorder %v1044_v12, 0  ;;  %v202_v46 = vsel %vm188_vm7, %v199_v32, %v201_v42 }
  0xa3   :  { %v422_v43 = vadd.s32 536870912, %v421_v34  ;;  %v1108_v47 = vmul.u32.u64.low %v1027_v55, %v198_v40  ;;  %v1109_v49 = vmul.u32.u64.high %v1027_v55, %v198_v40, %v1108_v47  ;;  %v270_v56 = vsel %vm269_vm11, %v1044_v12, 0 }
  0xa4   :  { %v1113_v50 = vmul.u32.u64.low %v1027_v55, %v202_v46  ;;  %v1114_v54 = vmul.u32.u64.high %v1027_v55, %v202_v46, %v1113_v50  ;;  %v1119_v58 = vshll.u32 %v266_v63, 8  ;;  %v1122_v3 = vadd.s32 %v1074_v1, %v1071_v59  ;;  %v85_v63 = vpop.permute.xlu1 %84 }
  0xa5   :  { %v1124_v61 = vshrl.u32 %v422_v43, 30  ;;  %v272_v7 = vand.u32 31, %v270_v56  ;;  %v1128_v9 = vadd.f32 %v1010_v41, %v1029_v60  ;;  %v210_v13 = vmul.u32 %v1027_v55, %v194_v39 }
  0xa6   :  { %v1131_v57 = vshrl.u32 %v270_v56, 5  ;;  %v1134_v12 = vmul.f32 %v1012_v44, %v59_v28  ;;  %v1137_v48 = vmul.f32 %v1012_v44, %v63_v5  ;;  %v213_v1 = vadd.s32 1, %v1109_v49 }
  0xa7   :  { %v424_v59 = vshll.u32 %v1124_v61, 30  ;;  %v273_v14 = vsub.s32 32, %v272_v7  ;;  %v1142_v41 = vmul.f32 %v1012_v44, %v67_v33  ;;  %vm212_vm12 = vc.u32 %v1114_v54, %v1108_v47 }
  0xa8   :  { %v275_v55 = vshll.u32 %v926_v2, %v272_v7  ;;  %v278_v60 = vshll.u32 %v927_v4, %v272_v7  ;;  %v1149_v15 = vmul.f32 %v1014_v45, %v81_v11  ;;  %v214_v16 = vsel %vm212_vm12, %v213_v1, %v1109_v49  ;;  %v89_v33 = vpop.permute.xlu1 %88 }
  0xa9   :  { %v1151_v5 = vsub.s32 %v421_v34, %v424_v59  ;;  %v276_v20 = vshrl.u32 %v927_v4, %v273_v14  ;;  %v281_v23 = vshll.u32 %v928_v6, %v272_v7  ;;  %v215_v44 = vadd.s32 %v214_v16, %v210_v13 }
  0xaa   :  { %v279_v24 = vshrl.u32 %v928_v6, %v273_v14  ;;  %v282_v51 = vshrl.u32 %v929_v8, %v273_v14  ;;  %v284_v25 = vshll.u32 %v929_v8, %v272_v7  ;;  %v285_v28 = vshrl.u32 %v930_v10, %v273_v14 }
  0xab   :  { %v427_v26 = vsub.s32 0, %v1151_v5  ;;  %v277_v27 = vor.u32 %v276_v20, %v275_v55  ;;  %v287_v29 = vshll.u32 %v930_v10, %v272_v7  ;;  %v216_v62 = vadd.s32 536870912, %v215_v44  ;;  %v103_v55 = vpop.permute.xlu0 %102 }
  0xac   :  { %v280_v30 = vor.u32 %v279_v24, %v278_v60  ;;  %v283_v32 = vor.u32 %v282_v51, %v281_v23  ;;  %v288_v4 = vshrl.u32 %v931_v22, %v273_v14  ;;  %v274_v6 = vshrl.u32 %v926_v2, %v273_v14 }
  0xad   :  { %v835_v34 = vmin.u32 %v427_v26, %v1151_v5  ;;  %v286_v35 = vor.u32 %v285_v28, %v284_v25  ;;  %v96_v8 = vmul.f32 %v1014_v45, %v85_v63  ;;  %v1166_v37 = vshrl.u32 %v216_v62, 30  ;;  %v107_v63 = vpop.permute.xlu1 %106 }
  0xae   :  { %v289_v38 = vor.u32 %v288_v4, %v287_v29  ;;  %vm290_vm13 = vcmp.lt.s32.totalorder %v1131_v57, 1  ;;  %vm293_vm14 = vcmp.lt.s32.totalorder %v1131_v57, 4  ;;  %vm291_vm15 = vcmp.lt.s32.totalorder %v1131_v57, 2 }
  0xaf   :  { %v429_v10 = vclz %v835_v34  ;;  %v295_v39 = vsel %vm293_vm14, %v283_v32, 2102212464  ;;  %v298_v22 = vsel %vm290_vm13, %v277_v27, %v280_v30  ;;  %v218_v40 = vshll.u32 %v1166_v37, 30 }
  0xb0   :  { %vm292_vm0 = vcmp.lt.s32.totalorder %v1131_v57, 3  ;;  %v299_v2 = vsel %vm293_vm14, %v286_v35, 920167782  ;;  %v302_v42 = vsel %vm290_vm13, %v280_v30, %v283_v32  ;;  %v294_v46 = vsel %vm290_vm13, %v274_v6, %v277_v27 }
  0xb1   :  { %v836_v43 = vadd.s32 4294967294, %v429_v10  ;;  %v300_v49 = vsel %vm292_vm0, %v283_v32, %v299_v2  ;;  %v303_v50 = vsel %vm293_vm14, %v289_v38, 1326507024  ;;  %v1173_v56 = vsub.s32 %v215_v44, %v218_v40 }
  0xb2   :  { %v296_v7 = vsel %vm292_vm0, %v280_v30, %v295_v39  ;;  %v301_v11 = vsel %vm291_vm15, %v298_v22, %v300_v49  ;;  %v304_v13 = vsel %vm292_vm0, %v286_v35, %v303_v50  ;;  %v76_v25 = vadd.f32 %v1134_v12, %v1023_v52  ;;  %v111_v12 = vpop.permute.xlu1 %110 }
  0xb3   :  { %vm837_vm2 = vcmp.lt.s32.totalorder %v836_v43, 0  ;;  %v305_v59 = vsel %vm291_vm15, %v302_v42, %v304_v13  ;;  %v1180_v1 = vmul.u32.u64.low %v1119_v58, %v301_v11  ;;  %v1181_v14 = vmul.u32.u64.high %v1119_v58, %v301_v11, %v1180_v1 }
  0xb4   :  { %v432_v60 = vsel %vm837_vm2, 0, %v836_v43  ;;  %v221_v16 = vsub.s32 0, %v1173_v56  ;;  %v1186_v20 = vmul.u32.u64.low %v1119_v58, %v305_v59  ;;  %v1187_v23 = vmul.u32.u64.high %v1119_v58, %v305_v59, %v1186_v20 }
  0xb5   :  { %v433_v44 = vsub.s32 32, %v432_v60  ;;  %v437_v24 = vsub.s32 4294967266, %v432_v60  ;;  %v297_v51 = vsel %vm291_vm15, %v294_v46, %v296_v7  ;;  %v434_v26 = vshll.u32 %v1151_v5, %v432_v60 }
  0xb6   :  { %v827_v27 = vmin.u32 %v221_v16, %v1173_v56  ;;  %v77_v28 = vadd.f32 %v1137_v48, %v1037_v0  ;;  %v117_v29 = vmul.f32 %v1025_v53, %v103_v55  ;;  %v316_v32 = vadd.s32 1, %v1181_v14 }
  0xb7   :  { %v435_v62 = vshrl.u32 %v1122_v3, %v433_v44  ;;  %v438_v30 = vadd.s32 127, %v437_v24  ;;  %v98_v57 = vadd.f32 %v1149_v15, %v76_v25  ;;  %v313_v34 = vmul.u32 %v1119_v58, %v297_v51 }
  0xb8   :  { %v223_v4 = vclz %v827_v27  ;;  %vm315_vm3 = vc.u32 %v1187_v23, %v1180_v1  ;;  %v99_v52 = vadd.f32 %v96_v8, %v77_v28  ;;  %v97_v38 = vmul.f32 %v1014_v45, %v89_v33 }
  0xb9   :  { %v436_v5 = vor.u32 %v435_v62, %v434_v26  ;;  %v439_v6 = vshll.u32 %v438_v30, 23  ;;  %v317_v0 = vsel %vm315_vm3, %v316_v32, %v1181_v14  ;;  %v120_v48 = vadd.f32 %v117_v29, %v98_v57 }
  0xba   :  { %v828_v35 = vadd.s32 4294967294, %v223_v4  ;;  %v318_v3 = vadd.s32 %v317_v0, %v313_v34  ;;  %v118_v10 = vmul.f32 %v1025_v53, %v107_v63  ;;  %v78_v58 = vadd.f32 %v1142_v41, %v1128_v9 }
  0xbb   :  { %v440_v15 = vor.u32 4788187, %v439_v6  ;;  %v119_v39 = vmul.f32 %v1025_v53, %v111_v12  ;;  %124 = vst.msk [vmem:[#allocation2] sm:$0xff] %vm123_vm1, %v120_v48  ;;  %v443_v2 = vcvt.s32.f32 %v436_v5  ;;  %v211_v45 = vadd.s32 %v1108_v47, %v1114_v54 }
  0xbc   :  { %vm829_vm4 = vcmp.lt.s32.totalorder %v828_v35, 0  ;;  %v319_v8 = vadd.s32 536870912, %v318_v3  ;;  %v121_v22 = vadd.f32 %v118_v10, %v99_v52  ;;  %v100_v43 = vadd.f32 %v97_v38, %v78_v58 }
  0xbd   :  { %v441_v40 = vand.u32 2147483647, %v440_v15  ;;  %v226_v42 = vsel %vm829_vm4, 0, %v828_v35  ;;  %vm363_vm5 = vcmp.lt.s32.totalorder %v991_v17, 0  ;;  %vm1224_vm6 = vcmp.le.f32.partialorder %v361_v19, 0.7853982 }
  0xbe   :  { %v227_v33 = vsub.s32 32, %v226_v42  ;;  %v231_v46 = vsub.s32 4294967266, %v226_v42  ;;  %v1213_v49 = vshrl.u32 %v319_v8, 30  ;;  %125 = vst.msk [vmem:[#allocation2 + $0x8] sm:$0xff] %vm123_vm1, %v121_v22  ;;  %v122_v53 = vadd.f32 %v119_v39, %v100_v43 }
  0xbf   :  { %v444_v9 = vmul.f32 %v443_v2, %v441_v40  ;;  %v228_v41 = vshll.u32 %v1173_v56, %v226_v42  ;;  %vm157_vm7 = vcmp.lt.s32.totalorder %v993_v18, 0  ;;  %v241_v27 = vsub.s32 4, %v1166_v37 }
  0xc0   :  { %v229_v50 = vshrl.u32 %v211_v45, %v227_v33  ;;  %v232_v7 = vadd.s32 127, %v231_v46  ;;  %v321_v11 = vshll.u32 %v1213_v49, 30  ;;  %126 = vst.msk [vmem:[#allocation2 + $0x10] sm:$0xff] %vm123_vm1, %v122_v53  ;;  %vm1235_vm9 = vcmp.le.f32.partialorder %v155_v21, 0.7853982 }
  0xc1   :  { %v445_v13 = vxor.u32 2147483648, %v444_v9  ;;  %v447_v30 = vsub.s32 4, %v1124_v61  ;;  %v314_v32 = vadd.s32 %v1180_v1, %v1187_v23  ;;  %v242_v34 = vsel %vm157_vm7, %v241_v27, %v1166_v37 }
  0xc2   :  { %v230_v63 = vor.u32 %v229_v50, %v228_v41  ;;  %v233_v59 = vshll.u32 %v232_v7, 23  ;;  %v322_v47 = vsub.s32 %v318_v3, %v321_v11  ;;  %v244_v48 = vsel %vm1235_vm9, 0, %v242_v34 }
  0xc3   :  { %v446_v54 = vsel %vm363_vm5, %v445_v13, %v444_v9  ;;  %v448_v5 = vsel %vm363_vm5, %v447_v30, %v1124_v61  ;;  %v248_v3 = vand.u32 3, %v244_v48  ;;  %v344_v58 = vsub.s32 4, %v1213_v49 }
  0xc4   :  { %v234_v14 = vor.u32 4788187, %v233_v59  ;;  %v324_v55 = vsub.s32 0, %v322_v47  ;;  %v237_v16 = vcvt.s32.f32 %v230_v63  ;;  %v449_v44 = vsel %vm1224_vm6, %v991_v17, %v446_v54 }
  0xc5   :  { %886 = vcosq.f32 %v449_v44  ;;  %v450_v23 = vsel %vm1224_vm6, 0, %v448_v5  ;;  %vm260_vm10 = vcmp.lt.s32.totalorder %v1003_v31, 0  ;;  %vm249_vm11 = vcmp.lt.s32.totalorder %v248_v3, 2 }
  0xc6   :  { %v235_v60 = vand.u32 2147483647, %v234_v14  ;;  %v831_v56 = vmin.u32 %v324_v55, %v322_v47  ;;  %888 = vsinq.f32 %v449_v44  ;;  %v454_v15 = vand.u32 3, %v450_v23 }
  0xc7   :  { %vm1263_vm12 = vcmp.le.f32.partialorder %v258_v36, 0.7853982  ;;  %vm250_vm13 = vcmp.eq.s32.totalorder %v248_v3, 0  ;;  %vm253_vm14 = vcmp.eq.s32.totalorder %v248_v3, 2  ;;  %v345_v46 = vsel %vm260_vm10, %v344_v58, %v1213_v49 }
  0xc8   :  { %v238_v24 = vmul.f32 %v237_v16, %v235_v60  ;;  %v326_v51 = vclz %v831_v56  ;;  %vm456_vm15 = vcmp.eq.s32.totalorder %v454_v15, 0  ;;  %vm459_vm0 = vcmp.eq.s32.totalorder %v454_v15, 2 }
  0xc9   :  { %vm247_vm1 = vweird.f32 %v993_v18  ;;  %vm455_vm2 = vcmp.lt.s32.totalorder %v454_v15, 2  ;;  %v347_v13 = vsel %vm1263_vm12, 0, %v345_v46  ;;  %v573_v63 = vadd.s32 3, %v244_v48 }
  0xca   :  { %v239_v25 = vxor.u32 2147483648, %v238_v24  ;;  %v832_v26 = vadd.s32 4294967294, %v326_v51  ;;  %vm453_vm3 = vweird.f32 %v991_v17  ;;  %v351_v14 = vand.u32 3, %v347_v13 }
  0xcb   :  { %v574_v54 = vand.u32 3, %v573_v63  ;;  %v781_v55 = vadd.s32 3, %v450_v23 }
  0xcc   :  { %v240_v28 = vsel %vm157_vm7, %v239_v25, %v238_v24  ;;  %vm833_vm8 = vcmp.lt.s32.totalorder %v832_v26, 0  ;;  %vm352_vm5 = vcmp.lt.s32.totalorder %v351_v14, 2  ;;  %vm353_vm7 = vcmp.eq.s32.totalorder %v351_v14, 0 }
  0xcd   :  { %v329_v29 = vsel %vm833_vm8, 0, %v832_v26  ;;  %v243_v62 = vsel %vm1235_vm9, %v993_v18, %v240_v28  ;;  %vm576_vm4 = vcmp.eq.s32.totalorder %v574_v54, 0  ;;  %vm579_vm6 = vcmp.eq.s32.totalorder %v574_v54, 2 }
  0xce   :  { %v330_v57 = vsub.s32 32, %v329_v29  ;;  %v334_v4 = vsub.s32 4294967266, %v329_v29  ;;  %890 = vcosq.f32 %v243_v62  ;;  %v331_v21 = vshll.u32 %v322_v47, %v329_v29 }
  0xcf   :  { %892 = vsinq.f32 %v243_v62  ;;  %v1251_v35 = vpop.eup %886  ;;  %v677_v47 = vadd.s32 3, %v347_v13  ;;  %v782_v44 = vand.u32 3, %v781_v55  ;;  %vm356_vm8 = vcmp.eq.s32.totalorder %v351_v14, 2 }
  0xd0   :  { %v332_v52 = vshrl.u32 %v314_v32, %v330_v57  ;;  %v335_v12 = vadd.s32 127, %v334_v4  ;;  %v1255_v37 = vpop.eup %888  ;;  %v460_v22 = vxor.u32 2147483648, %v1251_v35 }
  0xd1   :  { %v457_v8 = vxor.u32 2147483648, %v1255_v37  ;;  %v678_v60 = vand.u32 3, %v677_v47 }
  0xd2   :  { %v333_v6 = vor.u32 %v332_v52, %v331_v21  ;;  %v336_v0 = vshll.u32 %v335_v12, 23  ;;  %v461_v36 = vsel %vm459_vm0, %v460_v22, %v1255_v37  ;;  %vm783_vm0 = vcmp.lt.s32.totalorder %v782_v44, 2 }
  0xd3   :  { %v458_v41 = vsel %vm456_vm15, %v1251_v35, %v457_v8  ;;  %vm683_vm9 = vcmp.eq.s32.totalorder %v678_v60, 2  ;;  %vm787_vm15 = vcmp.eq.s32.totalorder %v782_v44, 2 }
  0xd4   :  { %v337_v1 = vor.u32 4788187, %v336_v0  ;;  %v340_v10 = vcvt.s32.f32 %v333_v6  ;;  %v462_v11 = vsel %vm455_vm2, %v458_v41, %v461_v36  ;;  %vm476_vm2 = vcmask 458112  }
  0xd5   :  { %v463_v59 = vsel %vm453_vm3, nan, %v462_v11 }
  0xd6   :  { %v338_v38 = vand.u32 2147483647, %v337_v1 }
  0xd8   :  { %v891_v61 = vpop.eup %890  ;;  %v341_v39 = vmul.f32 %v340_v10, %v338_v38 }
  0xd9   :  { %v893_v40 = vpop.eup %892  ;;  %v254_v2 = vxor.u32 2147483648, %v891_v61 }
  0xda   :  { %v342_v43 = vxor.u32 2147483648, %v341_v39  ;;  %v251_v45 = vxor.u32 2147483648, %v893_v40 }
  0xdb   :  { %v255_v33 = vsel %vm253_vm14, %v254_v2, %v893_v40  ;;  %v581_v19 = vsel %vm579_vm6, %v254_v2, %v893_v40  ;;  %vm784_vm14 = vcmp.eq.s32.totalorder %v782_v44, 0 }
  0xdc   :  { %v343_v9 = vsel %vm260_vm10, %v342_v43, %v341_v39  ;;  %v252_v53 = vsel %vm250_vm13, %v891_v61, %v251_v45  ;;  %vm679_vm10 = vcmp.lt.s32.totalorder %v678_v60, 2  ;;  %v578_v28 = vsel %vm576_vm4, %v891_v61, %v251_v45 }
  0xdd   :  { %v256_v50 = vsel %vm249_vm11, %v252_v53, %v255_v33  ;;  %v346_v7 = vsel %vm1263_vm12, %v1003_v31, %v343_v9  ;;  %vm680_vm11 = vcmp.eq.s32.totalorder %v678_v60, 0  ;;  %vm350_vm12 = vweird.f32 %v1003_v31 }
  0xde   :  { %v257_v49 = vsel %vm247_vm1, nan, %v256_v50  ;;  %894 = vcosq.f32 %v346_v7  ;;  %vm575_vm13 = vcmp.lt.s32.totalorder %v574_v54, 2  ;;  %v786_v4 = vsel %vm784_vm14, %v1251_v35, %v457_v8 }
  0xdf   :  { %467 = vrot.lane.b32.xlu0 %v257_v49, %s932_s4  ;;  %896 = vsinq.f32 %v346_v7  ;;  %v582_v57 = vsel %vm575_vm13, %v578_v28, %v581_v19  ;;  %v789_v31 = vsel %vm787_vm15, %v460_v22, %v1255_v37  ;;  %vm804_vm4 = vcmask 523712  }
  0xe0   :  { %v583_v34 = vsel %vm247_vm1, nan, %v582_v57  ;;  %v790_v21 = vsel %vm783_vm0, %v786_v4, %v789_v31 }
  0xe1   :  { %v791_v52 = vsel %vm453_vm3, nan, %v790_v21 }
  0xe3   :  { %471 = vrot.lane.b32.xlu0 %v463_v59, %s932_s4 }
  0xe8   :  { %v895_v16 = vpop.eup %894 }
  0xe9   :  { %v897_v56 = vpop.eup %896  ;;  %v357_v20 = vxor.u32 2147483648, %v895_v16 }
  0xea   :  { %v354_v24 = vxor.u32 2147483648, %v897_v56 }
  0xeb   :  { %v358_v51 = vsel %vm356_vm8, %v357_v20, %v897_v56  ;;  %v685_v25 = vsel %vm683_vm9, %v357_v20, %v897_v56 }
  0xec   :  { %v355_v26 = vsel %vm353_vm7, %v895_v16, %v354_v24  ;;  %v682_v27 = vsel %vm680_vm11, %v895_v16, %v354_v24 }
  0xed   :  { %v359_v29 = vsel %vm352_vm5, %v355_v26, %v358_v51  ;;  %v686_v62 = vsel %vm679_vm10, %v682_v27, %v685_v25 }
  0xee   :  { %v360_v30 = vsel %vm350_vm12, nan, %v359_v29  ;;  %v687_v32 = vsel %vm350_vm12, nan, %v686_v62 }
  0xef   :  { %469 = vrot.lane.b32.xlu1 %v360_v30, %s932_s4  ;;  %797 = vrot.lane.b32.xlu0 %v687_v32, %s933_s7 }
  0xf3   :  { %795 = vrot.lane.b32.xlu1 %v583_v34, %s933_s7 }
  0xf7   :  { %799 = vrot.lane.b32.xlu1 %v791_v52, %s933_s7 }
 0x151   :  { %v468_v12 = vpop.permute.xlu0 %467 }
 0x152   :  { %477 = vst.msk [vmem:[#allocation2] sm:$0xff] %vm476_vm2, %v468_v12 }
 0x155   :  { %v472_v5 = vpop.permute.xlu0 %471 }
 0x156   :  { %479 = vst.msk [vmem:[#allocation2 + $0x10] sm:$0xff] %vm476_vm2, %v472_v5 }
 0x161   :  { %v470_v6 = vpop.permute.xlu1 %469  ;;  %v798_v0 = vpop.permute.xlu0 %797 }
 0x162   :  { %478 = vst.msk [vmem:[#allocation2 + $0x8] sm:$0xff] %vm476_vm2, %v470_v6 }
 0x163   :  { %806 = vst.msk [vmem:[#allocation2 + $0x8] sm:$0xff] %vm804_vm4, %v798_v0 }
 0x165   :  { %v796_v48 = vpop.permute.xlu1 %795 }
 0x166   :  { %805 = vst.msk [vmem:[#allocation2] sm:$0xff] %vm804_vm4, %v796_v48 }
 0x169   :  { %v800_v18 = vpop.permute.xlu1 %799 }
 0x16a   :  { %807 = vst.msk [vmem:[#allocation2 + $0x10] sm:$0xff] %vm804_vm4, %v800_v18 }
 0x16b   :  { %909 = shalt.err (!%p906_p4)
}
 0x16c   :  { %s910_s13 = scalar_lea.hbm %s1319_s5, 384 }
 0x16d   :  { %p911_p5 = scmp.ne.s32.totalorder %s1319_s5, %s910_s13  ;;  %p914_p6 = scmp.lt.u32.totalorder %s910_s13, %s1319_s5 }
 0x16f   :  { %p916_p7 = pnand %p914_p6, %p911_p5 }
 0x171   :  { %919 = shalt.err (!%p916_p7)
}
 0x172   :  { %s935_s18 = smov 128   ;;  %s936_s19 = smov 8  }
 0x173   :  { %819 = dma.vmem_to_hbm [thread:$0]  %s814_s9, 384, %s1319_s5, [#allocation3], %s935_s18, %s935_s18, %s936_s19  }
 0x174   :  { %920 = dma.done.wait [#allocation3], 384  }
 0x175   :  { %921 = vsyncadd [#allocation3], 4294966912 }
 0x176   :  { %823 = vsyncpa [#allocation3], 1 }

</bundles_post_ra>
